<compile_context>
chip_gen: v7x
topology: tpu7x:2x2x1
jax: 0.10.0
libtpu: 0.0.40
codegen_flags: <defaults>
</compile_context>

<pallas_src>
import functools

import jax
import jax.numpy as jnp
import numpy as np
from jax import lax
from jax.experimental import pallas as pl
from jax.experimental.pallas import tpu as pltpu


def _res2_kernel(x_ref, w_ref, b_ref, g_ref, beta_ref, out_ref, sp_ref, *,
                 B, T, width, nums, eps, mxu_dtype):
    """One grid step == one channel group (last step copies the pass-through group).

    x_ref   : (B, width, T)  f32        -- this group's input slab
    w_ref   : (nums, width, width)      -- conv weights, (out, in) orientation, mxu_dtype
    b_ref   : (nums, width, 1) f32      -- conv bias
    g_ref   : (nums, width, 1) f32      -- BN gamma
    beta_ref: (nums, width, 1) f32      -- BN beta
    out_ref : (B, width, T)  f32        -- this group's output slab (also used as
                                           the pass-1 staging buffer for pre-BN y)
    sp_ref  : (B, width, T)  carry dtype -- VMEM scratch carrying the previous
                                           group's normalized output across steps
    """
    step = pl.program_id(0)

    @pl.when(step == 0)
    def _init():
        # No previous group yet: the residual carry starts at zero.
        sp_ref[...] = jnp.zeros_like(sp_ref)

    @pl.when(step < nums)
    def _conv_relu_bn():
        w = w_ref[step]            # (width_out, width_in), already mxu_dtype
        bconv = b_ref[step]        # (width, 1), broadcasts over T
        inv_n = 1.0 / float(B * T)

        # ---- pass 1: conv (MXU) + bias + ReLU; stage pre-BN y in out_ref ----
        # Lane-resident (width, T) partial sums only (VPU adds); the cross-lane
        # XLU reductions are deferred until after the batch loop.
        def p1_body(bi, carry):
            s1_acc, s2_acc = carry
            # sp = spx[i] (i==0, sp_ref zeroed) ; sp = prev + spx[i] (i>=1)
            spb = x_ref[bi] + sp_ref[bi].astype(jnp.float32)         # (width, T)
            y = jnp.dot(w, spb.astype(mxu_dtype),
                        preferred_element_type=jnp.float32)          # MXU, f32 acc
            y = jnp.maximum(y + bconv, 0.0)                          # bias + ReLU
            out_ref[bi] = y                 # stage pre-BN activation (VMEM block)
            return (s1_acc + y, s2_acc + y * y)

        zeros = jnp.zeros((width, T), jnp.float32)
        s1_acc, s2_acc = lax.fori_loop(0, B, p1_body, (zeros, zeros), unroll=2)

        # ---- BN statistics (training mode: batch stats, biased variance) ----
        s1 = jnp.sum(s1_acc, axis=1, keepdims=True)                  # (width, 1) XLU
        s2 = jnp.sum(s2_acc, axis=1, keepdims=True)                  # (width, 1) XLU
        mean = s1 * inv_n
        # TODO(synk): single-pass E[y^2]-E[y]^2 in f32 can lose precision at very
        # large B*T; switch to a shifted/two-pass formulation if tolerance demands.
        var = jnp.maximum(s2 * inv_n - mean * mean, 0.0)
        scale_c = g_ref[step] * lax.rsqrt(var + eps)                 # (width, 1)
        shift_c = beta_ref[step] - mean * scale_c                    # (width, 1)

        # ---- pass 2: fused normalize+affine from the staged activations ----
        need_carry = step < nums - 1   # the last conv group's carry is never read

        def p2_body(bi, carry):
            yn = out_ref[bi] * scale_c + shift_c                     # (width, T)
            out_ref[bi] = yn

            @pl.when(need_carry)
            def _():
                sp_ref[bi] = yn.astype(sp_ref.dtype)   # sp for the next group

            return carry

        lax.fori_loop(0, B, p2_body, 0, unroll=2)

    @pl.when(step >= nums)
    def _passthrough():
        # scale != 1: the last split group is passed through unchanged.
        out_ref[...] = x_ref[...]


def res2conv1d_relu_bn(x_bct, weight, bias, gamma, beta, *, scale, eps=1e-5,
                       mxu_dtype=jnp.bfloat16):
    """Forward pass of Res2Conv1dReluBn (kernel_size=1, training-mode BN).

    x_bct : (B, C, T) like PyTorch.            Returns (B, C, T) float32.
    weight: (nums, width, width)  Conv1d weights (out, in), kernel_size=1.
    bias  : (nums, width)         Conv1d bias.
    gamma : (nums, width)         BN weight.
    beta  : (nums, width)         BN bias.
    mxu_dtype: dtype of the matmul operands AND of the residual carry
               (accumulation is always f32). jnp.bfloat16 (fast, default) or
               jnp.float32 (exact PyTorch-f32 numerics).
    """
    B, C, T = x_bct.shape
    assert C % scale == 0, f"{C} % {scale} != 0"
    width = C // scale
    nums = scale if scale == 1 else scale - 1
    n_steps = nums if scale == 1 else nums + 1     # +1 step copies pass-through group
    assert weight.shape == (nums, width, width)

    carry_dtype = mxu_dtype   # bf16 carry on the fast path halves the scratch slab

    x = x_bct.astype(jnp.float32)
    w = weight.astype(mxu_dtype)                              # pre-cast once on host
    b = bias.reshape(nums, width, 1).astype(jnp.float32)
    g = gamma.reshape(nums, width, 1).astype(jnp.float32)
    bt = beta.reshape(nums, width, 1).astype(jnp.float32)

    kernel = functools.partial(_res2_kernel, B=B, T=T, width=width, nums=nums,
                               eps=float(eps), mxu_dtype=mxu_dtype)

    # VMEM budget: 2 double-buffered input blocks + 2 output blocks (f32)
    # + carry scratch + resident params + margin; clamp to v7x's 64 MiB.
    blk_elems = B * width * T
    param_bytes = w.size * w.dtype.itemsize + 3 * nums * width * 4
    vmem_needed = (4 * blk_elems * 4
                   + blk_elems * jnp.dtype(carry_dtype).itemsize
                   + 2 * param_bytes + (4 << 20))
    vmem_limit = int(min(max(vmem_needed, 8 << 20), 64 << 20))

    cost = pl.CostEstimate(
        flops=int(2 * nums * B * T * width * width),
        transcendentals=int(nums * width),
        bytes_accessed=int(2 * B * C * T * 4 + w.size * w.dtype.itemsize
                           + 3 * nums * width * 4),
    )

    out = pl.pallas_call(
        kernel,
        out_shape=jax.ShapeDtypeStruct((B, C, T), jnp.float32),
        grid=(n_steps,),
        in_specs=[
            # per-step: only this channel group's slab (double-buffered by Pallas)
            pl.BlockSpec((B, width, T), lambda s: (0, s, 0)),
            # parameters: full arrays, constant block index -> resident in VMEM
            pl.BlockSpec((nums, width, width), lambda s: (0, 0, 0)),
            pl.BlockSpec((nums, width, 1), lambda s: (0, 0, 0)),
            pl.BlockSpec((nums, width, 1), lambda s: (0, 0, 0)),
            pl.BlockSpec((nums, width, 1), lambda s: (0, 0, 0)),
        ],
        out_specs=pl.BlockSpec((B, width, T), lambda s: (0, s, 0)),
        scratch_shapes=[pltpu.VMEM((B, width, T), carry_dtype)],
        compiler_params=pltpu.CompilerParams(
            dimension_semantics=("arbitrary",),    # groups are sequentially dependent
            vmem_limit_bytes=vmem_limit),
        cost_estimate=cost,
    )(x, w, b, g, bt)
    return out


def _reference(x, weight, bias, gamma, beta, scale, eps=1e-5, mxu_dtype=None):
    """Pure-JAX mirror of the PyTorch forward (training-mode BN).

    If mxu_dtype is given, the matmul operands AND the residual carry are
    rounded to that dtype (accumulation stays f32), mirroring the fast path.
    """
    B, C, T = x.shape
    width = C // scale
    nums = scale if scale == 1 else scale - 1
    spx = [x[:, i * width:(i + 1) * width, :] for i in range(scale)]
    out = []
    sp = spx[0]
    for i in range(nums):
        if i >= 1:
            sp = sp + spx[i]
        w = weight[i]
        if mxu_dtype is not None:
            w_op = w.astype(mxu_dtype).astype(jnp.float32)
            sp_op = sp.astype(mxu_dtype).astype(jnp.float32)
        else:
            w_op, sp_op = w, sp
        y = jnp.einsum('oc,bct->bot', w_op, sp_op) + bias[i][None, :, None]
        y = jnp.maximum(y, 0.0)
        mean = jnp.mean(y, axis=(0, 2), keepdims=True)
        var = jnp.mean((y - mean) ** 2, axis=(0, 2), keepdims=True)
        y = (y - mean) / jnp.sqrt(var + eps)
        y = y * gamma[i][None, :, None] + beta[i][None, :, None]
        out.append(y)
        # The kernel carries sp in mxu_dtype on the fast path.
        sp = y if mxu_dtype is None else y.astype(mxu_dtype).astype(jnp.float32)
    if scale != 1:
        out.append(spx[nums])
    return jnp.concatenate(out, axis=1)


if __name__ == "__main__":
    # Small shapes: channels % scale == 0, and width = C/scale a multiple of 8
    # (f32 sublane tile) so the per-group channel blocks are layout-aligned.
    B, C, T, scale = 2, 32, 16, 4
    width = C // scale
    nums = scale - 1

    key = jax.random.PRNGKey(0)
    k1, k2, k3, k4, k5 = jax.random.split(key, 5)
    x = jax.random.normal(k1, (B, C, T), dtype=jnp.float32)
    weight = 0.5 * jax.random.normal(k2, (nums, width, width), dtype=jnp.float32)
    bias = 0.1 * jax.random.normal(k3, (nums, width), dtype=jnp.float32)
    gamma = 1.0 + 0.1 * jax.random.normal(k4, (nums, width), dtype=jnp.float32)
    beta = 0.1 * jax.random.normal(k5, (nums, width), dtype=jnp.float32)

    # Exact path (f32 MXU operands + f32 carry) -- PyTorch-f32 module numerics.
    out_f32 = jax.block_until_ready(
        res2conv1d_relu_bn(x, weight, bias, gamma, beta, scale=scale,
                           mxu_dtype=jnp.float32))
    # Fast path (bf16 MXU operands + bf16 carry, f32 accumulation).
    out_bf16 = jax.block_until_ready(
        res2conv1d_relu_bn(x, weight, bias, gamma, beta, scale=scale))

    ref_f32 = _reference(x, weight, bias, gamma, beta, scale)
    ref_bf16 = _reference(x, weight, bias, gamma, beta, scale,
                          mxu_dtype=jnp.bfloat16)

    assert out_f32.shape == (B, C, T) and out_bf16.shape == (B, C, T)

    ok_f32 = np.allclose(np.asarray(out_f32), np.asarray(ref_f32),
                         rtol=1e-4, atol=1e-4)
    # Looser tolerance: bf16 rounding compounds across the chained groups.
    ok_bf16 = np.allclose(np.asarray(out_bf16), np.asarray(ref_bf16),
                          rtol=5e-2, atol=5e-2)

    if ok_f32 and ok_bf16:
        print("KERNEL_OK")
    else:
        print("MISMATCH: f32 max abs err =",
              float(jnp.max(jnp.abs(out_f32 - ref_f32))),
              " bf16 max abs err =",
              float(jnp.max(jnp.abs(out_bf16 - ref_bf16))))
</pallas_src>

<mosaic_0001>
module attributes {stable_mosaic.version = 11 : i64} {
  func.func @_res2_kernel(%arg0: i32, %arg1: memref<2x8x16xf32, #tpu.memory_space<vmem>>, %arg2: memref<3x8x8xf32, #tpu.memory_space<vmem>>, %arg3: memref<3x8x1xf32, #tpu.memory_space<vmem>>, %arg4: memref<3x8x1xf32, #tpu.memory_space<vmem>>, %arg5: memref<3x8x1xf32, #tpu.memory_space<vmem>>, %arg6: memref<2x8x16xf32, #tpu.memory_space<vmem>>, %arg7: memref<2x8x16xf32, #tpu.memory_space<vmem>>) attributes {dimension_semantics = [#tpu.dimension_semantics<arbitrary>], iteration_bounds = array<i64: 4>, scalar_prefetch = 0 : i64, scratch_operands = 1 : i64, tpu.core_type = #tpu.core_type<tc>, window_params = [{transform_indices = @transform_0, window_bounds = array<i64: 2, 8, 16>}, {pipeline_mode = #tpu.pipeline_mode<synchronous>, transform_indices = @transform_1, window_bounds = array<i64: 3, 8, 8>}, {pipeline_mode = #tpu.pipeline_mode<synchronous>, transform_indices = @transform_2, window_bounds = array<i64: 3, 8, 1>}, {pipeline_mode = #tpu.pipeline_mode<synchronous>, transform_indices = @transform_3, window_bounds = array<i64: 3, 8, 1>}, {pipeline_mode = #tpu.pipeline_mode<synchronous>, transform_indices = @transform_4, window_bounds = array<i64: 3, 8, 1>}, {transform_indices = @transform_5, window_bounds = array<i64: 2, 8, 16>}]} {
    %c0_i32 = arith.constant 0 : i32
    %0 = arith.cmpi eq, %arg0, %c0_i32 : i32
    %1 = arith.extui %0 : i1 to i32
    %c0_i32_0 = arith.constant 0 : i32
    %2 = arith.cmpi ne, %1, %c0_i32_0 : i32
    scf.if %2 {
      %cst = arith.constant 0.000000e+00 : f32
      %9 = vector.broadcast %cst : f32 to vector<2x8x16xf32>
      %c0 = arith.constant 0 : index
      %c0_4 = arith.constant 0 : index
      %c0_5 = arith.constant 0 : index
      %10 = vector.load %arg7[%c0, %c0_4, %c0_5] : memref<2x8x16xf32, #tpu.memory_space<vmem>>, vector<2x8x16xf32>
      tpu.vector_store %arg7[%c0, %c0_4, %c0_5], %9 {strides = array<i32>} : memref<2x8x16xf32, #tpu.memory_space<vmem>>, vector<2x8x16xf32>,
    } else {
    }
    %c3_i32 = arith.constant 3 : i32
    %3 = arith.cmpi slt, %arg0, %c3_i32 : i32
    %4 = arith.extui %3 : i1 to i32
    %c0_i32_1 = arith.constant 0 : i32
    %5 = arith.cmpi ne, %4, %c0_i32_1 : i32
    scf.if %5 {
      %9 = arith.index_cast %arg0 : i32 to index
      %c0 = arith.constant 0 : index
      %c0_4 = arith.constant 0 : index
      %10 = vector.load %arg2[%9, %c0, %c0_4] : memref<3x8x8xf32, #tpu.memory_space<vmem>>, vector<1x8x8xf32>
      %11 = vector.shape_cast %10 : vector<1x8x8xf32> to vector<8x8xf32>
      %12 = arith.index_cast %arg0 : i32 to index
      %c0_5 = arith.constant 0 : index
      %c0_6 = arith.constant 0 : index
      %13 = vector.load %arg3[%12, %c0_5, %c0_6] : memref<3x8x1xf32, #tpu.memory_space<vmem>>, vector<1x8x1xf32>
      %14 = vector.shape_cast %13 : vector<1x8x1xf32> to vector<8x1xf32>
      %cst = arith.constant 0.000000e+00 : f32
      %15 = vector.broadcast %cst : f32 to vector<8x16xf32>
      %c0_i32_7 = arith.constant 0 : i32
      %16 = arith.index_cast %c0_i32_7 : i32 to index
      %c0_8 = arith.constant 0 : index
      %c0_9 = arith.constant 0 : index
      %17 = vector.load %arg1[%16, %c0_8, %c0_9] : memref<2x8x16xf32, #tpu.memory_space<vmem>>, vector<1x8x16xf32>
      %18 = vector.shape_cast %17 : vector<1x8x16xf32> to vector<8x16xf32>
      %19 = arith.index_cast %c0_i32_7 : i32 to index
      %c0_10 = arith.constant 0 : index
      %c0_11 = arith.constant 0 : index
      %20 = vector.load %arg7[%19, %c0_10, %c0_11] : memref<2x8x16xf32, #tpu.memory_space<vmem>>, vector<1x8x16xf32>
      %21 = vector.shape_cast %20 : vector<1x8x16xf32> to vector<8x16xf32>
      %22 = arith.addf %18, %21 : vector<8x16xf32>
      %cst_12 = arith.constant dense<0.000000e+00> : vector<8x16xf32>
      %23 = tpu.matmul %11, %22, %cst_12 {dimension_numbers = #tpu.dot_dimension_numbers<[1], [0], [0], [1], [0, 0, 1, 1], [], []>} : vector<8x8xf32>, vector<8x16xf32>, vector<8x16xf32> -> vector<8x16xf32>
      %24 = vector.broadcast %14 : vector<8x1xf32> to vector<8x16xf32>
      %25 = arith.addf %23, %24 : vector<8x16xf32>
      %cst_13 = arith.constant 0.000000e+00 : f32
      %26 = vector.broadcast %cst_13 : f32 to vector<8x16xf32>
      %27 = arith.maximumf %25, %26 : vector<8x16xf32>
      %28 = arith.index_cast %c0_i32_7 : i32 to index
      %c0_14 = arith.constant 0 : index
      %c0_15 = arith.constant 0 : index
      %29 = vector.load %arg6[%28, %c0_14, %c0_15] : memref<2x8x16xf32, #tpu.memory_space<vmem>>, vector<1x8x16xf32>
      %30 = vector.shape_cast %29 : vector<1x8x16xf32> to vector<8x16xf32>
      %31 = vector.shape_cast %27 : vector<8x16xf32> to vector<1x8x16xf32>
      tpu.vector_store %arg6[%28, %c0_14, %c0_15], %31 {strides = array<i32>} : memref<2x8x16xf32, #tpu.memory_space<vmem>>, vector<1x8x16xf32>,
      %32 = arith.addf %15, %27 : vector<8x16xf32>
      %33 = arith.mulf %27, %27 : vector<8x16xf32>
      %34 = arith.addf %15, %33 : vector<8x16xf32>
      %c1_i32 = arith.constant 1 : i32
      %35 = arith.index_cast %c1_i32 : i32 to index
      %c0_16 = arith.constant 0 : index
      %c0_17 = arith.constant 0 : index
      %36 = vector.load %arg1[%35, %c0_16, %c0_17] : memref<2x8x16xf32, #tpu.memory_space<vmem>>, vector<1x8x16xf32>
      %37 = vector.shape_cast %36 : vector<1x8x16xf32> to vector<8x16xf32>
      %38 = arith.index_cast %c1_i32 : i32 to index
      %c0_18 = arith.constant 0 : index
      %c0_19 = arith.constant 0 : index
      %39 = vector.load %arg7[%38, %c0_18, %c0_19] : memref<2x8x16xf32, #tpu.memory_space<vmem>>, vector<1x8x16xf32>
      %40 = vector.shape_cast %39 : vector<1x8x16xf32> to vector<8x16xf32>
      %41 = arith.addf %37, %40 : vector<8x16xf32>
      %cst_20 = arith.constant dense<0.000000e+00> : vector<8x16xf32>
      %42 = tpu.matmul %11, %41, %cst_20 {dimension_numbers = #tpu.dot_dimension_numbers<[1], [0], [0], [1], [0, 0, 1, 1], [], []>} : vector<8x8xf32>, vector<8x16xf32>, vector<8x16xf32> -> vector<8x16xf32>
      %43 = vector.broadcast %14 : vector<8x1xf32> to vector<8x16xf32>
      %44 = arith.addf %42, %43 : vector<8x16xf32>
      %cst_21 = arith.constant 0.000000e+00 : f32
      %45 = vector.broadcast %cst_21 : f32 to vector<8x16xf32>
      %46 = arith.maximumf %44, %45 : vector<8x16xf32>
      %47 = arith.index_cast %c1_i32 : i32 to index
      %c0_22 = arith.constant 0 : index
      %c0_23 = arith.constant 0 : index
      %48 = vector.load %arg6[%47, %c0_22, %c0_23] : memref<2x8x16xf32, #tpu.memory_space<vmem>>, vector<1x8x16xf32>
      %49 = vector.shape_cast %48 : vector<1x8x16xf32> to vector<8x16xf32>
      %50 = vector.shape_cast %46 : vector<8x16xf32> to vector<1x8x16xf32>
      tpu.vector_store %arg6[%47, %c0_22, %c0_23], %50 {strides = array<i32>} : memref<2x8x16xf32, #tpu.memory_space<vmem>>, vector<1x8x16xf32>,
      %51 = arith.addf %32, %46 : vector<8x16xf32>
      %52 = arith.mulf %46, %46 : vector<8x16xf32>
      %53 = arith.addf %34, %52 : vector<8x16xf32>
      %c2_i32 = arith.constant 2 : i32
      %cst_24 = arith.constant dense<0.000000e+00> : vector<8xf32>
      %54 = vector.multi_reduction <add>, %51, %cst_24 [1] : vector<8x16xf32> to vector<8xf32>
      %55 = vector.shape_cast %54 : vector<8xf32> to vector<8x1xf32>
      %cst_25 = arith.constant dense<0.000000e+00> : vector<8xf32>
      %56 = vector.multi_reduction <add>, %53, %cst_25 [1] : vector<8x16xf32> to vector<8xf32>
      %57 = vector.shape_cast %56 : vector<8xf32> to vector<8x1xf32>
      %cst_26 = arith.constant 3.125000e-02 : f32
      %58 = vector.broadcast %cst_26 : f32 to vector<8x1xf32>
      %59 = arith.mulf %55, %58 : vector<8x1xf32>
      %cst_27 = arith.constant 3.125000e-02 : f32
      %60 = vector.broadcast %cst_27 : f32 to vector<8x1xf32>
      %61 = arith.mulf %57, %60 : vector<8x1xf32>
      %62 = arith.mulf %59, %59 : vector<8x1xf32>
      %63 = arith.subf %61, %62 : vector<8x1xf32>
      %cst_28 = arith.constant 0.000000e+00 : f32
      %64 = vector.broadcast %cst_28 : f32 to vector<8x1xf32>
      %65 = arith.maximumf %63, %64 : vector<8x1xf32>
      %66 = arith.index_cast %arg0 : i32 to index
      %c0_29 = arith.constant 0 : index
      %c0_30 = arith.constant 0 : index
      %67 = vector.load %arg4[%66, %c0_29, %c0_30] : memref<3x8x1xf32, #tpu.memory_space<vmem>>, vector<1x8x1xf32>
      %68 = vector.shape_cast %67 : vector<1x8x1xf32> to vector<8x1xf32>
      %cst_31 = arith.constant 9.99999974E-6 : f32
      %69 = vector.broadcast %cst_31 : f32 to vector<8x1xf32>
      %70 = arith.addf %65, %69 : vector<8x1xf32>
      %71 = math.rsqrt %70 : vector<8x1xf32>
      %72 = arith.mulf %68, %71 : vector<8x1xf32>
      %73 = arith.index_cast %arg0 : i32 to index
      %c0_32 = arith.constant 0 : index
      %c0_33 = arith.constant 0 : index
      %74 = vector.load %arg5[%73, %c0_32, %c0_33] : memref<3x8x1xf32, #tpu.memory_space<vmem>>, vector<1x8x1xf32>
      %75 = vector.shape_cast %74 : vector<1x8x1xf32> to vector<8x1xf32>
      %76 = arith.mulf %59, %72 : vector<8x1xf32>
      %77 = arith.subf %75, %76 : vector<8x1xf32>
      %c2_i32_34 = arith.constant 2 : i32
      %78 = arith.cmpi slt, %arg0, %c2_i32_34 : i32
      %c0_i32_35 = arith.constant 0 : i32
      %79 = arith.index_cast %c0_i32_35 : i32 to index
      %c0_36 = arith.constant 0 : index
      %c0_37 = arith.constant 0 : index
      %80 = vector.load %arg6[%79, %c0_36, %c0_37] : memref<2x8x16xf32, #tpu.memory_space<vmem>>, vector<1x8x16xf32>
      %81 = vector.shape_cast %80 : vector<1x8x16xf32> to vector<8x16xf32>
      %82 = vector.broadcast %72 : vector<8x1xf32> to vector<8x16xf32>
      %83 = arith.mulf %81, %82 : vector<8x16xf32>
      %84 = vector.broadcast %77 : vector<8x1xf32> to vector<8x16xf32>
      %85 = arith.addf %83, %84 : vector<8x16xf32>
      %86 = arith.index_cast %c0_i32_35 : i32 to index
      %c0_38 = arith.constant 0 : index
      %c0_39 = arith.constant 0 : index
      %87 = vector.load %arg6[%86, %c0_38, %c0_39] : memref<2x8x16xf32, #tpu.memory_space<vmem>>, vector<1x8x16xf32>
      %88 = vector.shape_cast %87 : vector<1x8x16xf32> to vector<8x16xf32>
      %89 = vector.shape_cast %85 : vector<8x16xf32> to vector<1x8x16xf32>
      tpu.vector_store %arg6[%86, %c0_38, %c0_39], %89 {strides = array<i32>} : memref<2x8x16xf32, #tpu.memory_space<vmem>>, vector<1x8x16xf32>,
      %90 = arith.extui %78 : i1 to i32
      %c0_i32_40 = arith.constant 0 : i32
      %91 = arith.cmpi ne, %90, %c0_i32_40 : i32
      scf.if %91 {
        %105 = arith.index_cast %c0_i32_35 : i32 to index
        %c0_48 = arith.constant 0 : index
        %c0_49 = arith.constant 0 : index
        %106 = vector.load %arg7[%105, %c0_48, %c0_49] : memref<2x8x16xf32, #tpu.memory_space<vmem>>, vector<1x8x16xf32>
        %107 = vector.shape_cast %106 : vector<1x8x16xf32> to vector<8x16xf32>
        %108 = vector.shape_cast %85 : vector<8x16xf32> to vector<1x8x16xf32>
        tpu.vector_store %arg7[%105, %c0_48, %c0_49], %108 {strides = array<i32>} : memref<2x8x16xf32, #tpu.memory_space<vmem>>, vector<1x8x16xf32>,
      } else {
      }
      %c1_i32_41 = arith.constant 1 : i32
      %92 = arith.index_cast %c1_i32_41 : i32 to index
      %c0_42 = arith.constant 0 : index
      %c0_43 = arith.constant 0 : index
      %93 = vector.load %arg6[%92, %c0_42, %c0_43] : memref<2x8x16xf32, #tpu.memory_space<vmem>>, vector<1x8x16xf32>
      %94 = vector.shape_cast %93 : vector<1x8x16xf32> to vector<8x16xf32>
      %95 = vector.broadcast %72 : vector<8x1xf32> to vector<8x16xf32>
      %96 = arith.mulf %94, %95 : vector<8x16xf32>
      %97 = vector.broadcast %77 : vector<8x1xf32> to vector<8x16xf32>
      %98 = arith.addf %96, %97 : vector<8x16xf32>
      %99 = arith.index_cast %c1_i32_41 : i32 to index
      %c0_44 = arith.constant 0 : index
      %c0_45 = arith.constant 0 : index
      %100 = vector.load %arg6[%99, %c0_44, %c0_45] : memref<2x8x16xf32, #tpu.memory_space<vmem>>, vector<1x8x16xf32>
      %101 = vector.shape_cast %100 : vector<1x8x16xf32> to vector<8x16xf32>
      %102 = vector.shape_cast %98 : vector<8x16xf32> to vector<1x8x16xf32>
      tpu.vector_store %arg6[%99, %c0_44, %c0_45], %102 {strides = array<i32>} : memref<2x8x16xf32, #tpu.memory_space<vmem>>, vector<1x8x16xf32>,
      %103 = arith.extui %78 : i1 to i32
      %c0_i32_46 = arith.constant 0 : i32
      %104 = arith.cmpi ne, %103, %c0_i32_46 : i32
      scf.if %104 {
        %105 = arith.index_cast %c1_i32_41 : i32 to index
        %c0_48 = arith.constant 0 : index
        %c0_49 = arith.constant 0 : index
        %106 = vector.load %arg7[%105, %c0_48, %c0_49] : memref<2x8x16xf32, #tpu.memory_space<vmem>>, vector<1x8x16xf32>
        %107 = vector.shape_cast %106 : vector<1x8x16xf32> to vector<8x16xf32>
        %108 = vector.shape_cast %98 : vector<8x16xf32> to vector<1x8x16xf32>
        tpu.vector_store %arg7[%105, %c0_48, %c0_49], %108 {strides = array<i32>} : memref<2x8x16xf32, #tpu.memory_space<vmem>>, vector<1x8x16xf32>,
      } else {
      }
      %c2_i32_47 = arith.constant 2 : i32
    } else {
    }
    %c3_i32_2 = arith.constant 3 : i32
    %6 = arith.cmpi sge, %arg0, %c3_i32_2 : i32
    %7 = arith.extui %6 : i1 to i32
    %c0_i32_3 = arith.constant 0 : i32
    %8 = arith.cmpi ne, %7, %c0_i32_3 : i32
    scf.if %8 {
      %c0 = arith.constant 0 : index
      %c0_4 = arith.constant 0 : index
      %c0_5 = arith.constant 0 : index
      %9 = vector.load %arg1[%c0, %c0_4, %c0_5] : memref<2x8x16xf32, #tpu.memory_space<vmem>>, vector<2x8x16xf32>
      %c0_6 = arith.constant 0 : index
      %c0_7 = arith.constant 0 : index
      %c0_8 = arith.constant 0 : index
      %10 = vector.load %arg6[%c0_6, %c0_7, %c0_8] : memref<2x8x16xf32, #tpu.memory_space<vmem>>, vector<2x8x16xf32>
      tpu.vector_store %arg6[%c0_6, %c0_7, %c0_8], %9 {strides = array<i32>} : memref<2x8x16xf32, #tpu.memory_space<vmem>>, vector<2x8x16xf32>,
    } else {
    }
    return
  }
  func.func @transform_0(%arg0: i32) -> (i32, i32, i32) {
    %c0_i32 = arith.constant 0 : i32
    %c0_i32_0 = arith.constant 0 : i32
    %c0_i32_1 = arith.constant 0 : i32
    return %c0_i32, %arg0, %c0_i32_0 : i32, i32, i32
  }
  func.func @transform_1(%arg0: i32) -> (i32, i32, i32) {
    %c0_i32 = arith.constant 0 : i32
    %c0_i32_0 = arith.constant 0 : i32
    %c0_i32_1 = arith.constant 0 : i32
    %c0_i32_2 = arith.constant 0 : i32
    return %c0_i32, %c0_i32_0, %c0_i32_1 : i32, i32, i32
  }
  func.func @transform_2(%arg0: i32) -> (i32, i32, i32) {
    %c0_i32 = arith.constant 0 : i32
    %c0_i32_0 = arith.constant 0 : i32
    %c0_i32_1 = arith.constant 0 : i32
    %c0_i32_2 = arith.constant 0 : i32
    return %c0_i32, %c0_i32_0, %c0_i32_1 : i32, i32, i32
  }
  func.func @transform_3(%arg0: i32) -> (i32, i32, i32) {
    %c0_i32 = arith.constant 0 : i32
    %c0_i32_0 = arith.constant 0 : i32
    %c0_i32_1 = arith.constant 0 : i32
    %c0_i32_2 = arith.constant 0 : i32
    return %c0_i32, %c0_i32_0, %c0_i32_1 : i32, i32, i32
  }
  func.func @transform_4(%arg0: i32) -> (i32, i32, i32) {
    %c0_i32 = arith.constant 0 : i32
    %c0_i32_0 = arith.constant 0 : i32
    %c0_i32_1 = arith.constant 0 : i32
    %c0_i32_2 = arith.constant 0 : i32
    return %c0_i32, %c0_i32_0, %c0_i32_1 : i32, i32, i32
  }
  func.func @transform_5(%arg0: i32) -> (i32, i32, i32) {
    %c0_i32 = arith.constant 0 : i32
    %c0_i32_0 = arith.constant 0 : i32
    %c0_i32_1 = arith.constant 0 : i32
    return %c0_i32, %arg0, %c0_i32_0 : i32, i32, i32
  }
}

</mosaic_0001>

<bundles_post_ra>
// kernel: tpu_custom_call.1
= control target key start
LH: loop header
LB: loop body
LE: loop exit
PB: predicated region body
PF: predicated region fallthrough
CT: control target
= control target key end

     0   :  { %s736_s18 = smov 0   ;;  %s738_s19 = smov 0   ;;  %s835_s0 = inlined_call_operand.vmem [shape: f32[2,32,16], index: 0, kind: input, shape index: {}]   ;;  %s836_s1 = inlined_call_operand.vmem [shape: f32[3,8,8], index: 1, kind: input, shape index: {}]   ;;  %s837_s2 = inlined_call_operand.vmem [shape: f32[3,8,1], index: 2, kind: input, shape index: {}]   ;;  %s838_s3 = inlined_call_operand.vmem [shape: f32[3,8,1], index: 3, kind: input, shape index: {}]   ;;  %s839_s4 = inlined_call_operand.vmem [shape: f32[3,8,1], index: 4, kind: input, shape index: {}]   ;;  %s840_s5 = inlined_call_operand.vmem [shape: f32[2,32,16], index: 5, kind: output, shape index: {}]  }
   0x1   :  { %s740_s20 = smov 0  }
   0x2 LB: > { %s749_s21 = sadd.s32 4294967295, %s700_s20   ;;  %s751_s22 = sadd.s32 1, %s700_s20   ;;  %s700_s20 = sphi %s740_s20, %s844_s20   ;;  %s696_s19 = sphi %s738_s19, %s843_s19   ;;  %s692_s18 = sphi %s736_s18, %s842_s18  }
   0x3   : > { %s19_s23 = ssub.s32 %s700_s20, %s751_s22  ;;  %s22_s24 = sadd.s32 1, %s696_s19 }
   0x4   : > { %p20_p0 = scmp.eq.s32.totalorder %s19_s23, 0  ;;  %p29_p1 = scmp.ne.s32.totalorder %s696_s19, %s692_s18 }
   0x5   : > { %p30_p2 = scmp.eq.s32.totalorder %s700_s20, 0  ;;  %p143_p3 = scmp.eq.s32.totalorder %s749_s21, 3 }
   0x6   : > { %s759_s25 = scalar_select %p20_p0, %s696_s19, %s22_s24  }
   0x7   : > { %p31_p4 = por %p30_p2, %p29_p1  ;;  %p761_p5 = por %p143_p3, %p29_p1 }
   0x8   : > { %p610_p6 = scmp.ge.s32.totalorder %s700_s20, 4 }
   0xa   : > { %177 = sbr.rel (%p610_p6) target bundleno = 24 (0x18), region = 32 }
  0x11   : > { %180 = sbr.rel (!%p31_p4) target bundleno = 24 (0x18), region = 36  ;;  %s182_s27 = sand.u32 (%p31_p4), 1, %s696_s19  }
  0x12   : > { %s612_s28 = sshll.u32 (%p31_p4), %s700_s20, 3  ;;  %s611_s29 = sshll.u32 (%p31_p4), %s182_s27, 4 }
  0x13   : > { %s186_s7 = scalar_lea.vmem (%p31_p4), %s835_s0, %s612_s28  ;;  %s184_s8 = scalar_lea.vmem (%p31_p4), [#allocation3], %s611_s29 }
  0x14   : > { %v216_v0 = vld [vmem:[%s186_s7] sm:$0xff] (%p31_p4) }
  0x15   : > { %v218_v1 = vld [vmem:[%s186_s7 + $0x20] sm:$0xff] (%p31_p4)  ;;  %217 = vst [vmem:[%s184_s8] sm:$0xff] (%p31_p4), %v216_v0 }
  0x16   : > { %219 = vst [vmem:[%s184_s8 + $0x8] sm:$0xff] (%p31_p4), %v218_v1 }
  0x18 PF: > { %p613_p7 = scmp.ge.s32.totalorder %s700_s20, 1  ;;  %p224_p8 = scmp.lt.s32.totalorder %s700_s20, 5 }
  0x1a   : > { %p225_p9 = pnand %p613_p7, %p224_p8 }
  0x1b   : > { %s231_s9 = sand.u32 (!%p225_p9), 1, %s692_s18   ;;  %p616_p10 = scmp.ne.s32.totalorder (!%p225_p9), %s749_s21, 0 }
  0x1c   : > { %228 = sbr.rel (%p225_p9) target bundleno = 590 (0x24e), region = 74  ;;  %s614_s10 = sshll.u32 (!%p225_p9), %s231_s9, 4 }
  0x1d   : > { %s770_s11 = scalar_lea.vmem (!%p225_p9), [#allocation3], %s614_s10  ;;  %s772_s12 = scalar_lea.vmem (!%p225_p9), [#allocation4], %s614_s10 }
  0x23   : > { %260 = sbr.rel (%p616_p10) target bundleno = 42 (0x2a), region = 82  ;;  %vm261_vm0 = vcmask (!%p616_p10), 130048   ;;  %v702_v2 = vmov (!%p616_p10), 0.0  }
  0x24   : > { %262 = vst.msk [vmem:[#allocation2] sm:$0xff] (!%p616_p10), %vm261_vm0, %v702_v2  ;;  %263 = vst.msk [vmem:[#allocation2 + $0x8] sm:$0xff] (!%p616_p10), %vm261_vm0, %v702_v2 }
  0x2a PF: > { %p617_p11 = scmp.ge.s32.totalorder %s749_s21, 3 }
  0x2b   : > { %v273_v3 = vld [vmem:[%s770_s11] sm:$0xff] (!%p617_p11)  ;;  %v620_v5 = vld [vmem:[%s770_s11 + $0x8] sm:$0xff] (!%p617_p11)  ;;  %s779_s13 = sshll.u32 (!%p617_p11), %s749_s21, 3  ;;  %v703_v6 = vmov (!%p617_p11), 0.0   ;;  %vm281_vm1 = vcmask (!%p617_p11), 64512   ;;  %vm704_vm2 = vmmov (!%p617_p11), 0  }
  0x2c   : > { %267 = sbr.rel (%p617_p11) target bundleno = 574 (0x23e), region = 86  ;;  %v274_v4 = vld [vmem:[#allocation2] sm:$0xff] (!%p617_p11)  ;;  %636 = vmatprep.subr.mxu0 (!%p617_p11), %v703_v6  ;;  %641 = vmatprep.subr.mxu1 (!%p617_p11), %v703_v6  ;;  %v364_v8 = vld [vmem:[#allocation2 + $0x8] sm:$0xff] (!%p617_p11)  ;;  %s269_s16 = scalar_lea.vmem (!%p617_p11), %s836_s1, %s779_s13  ;;  %v705_v12 = vmov (!%p617_p11), 0   ;;  %vm356_vm3 = vcmask (!%p617_p11), 130048  }
  0x2d   : > { %v275_v7 = vadd.f32 (!%p617_p11), %v274_v4, %v273_v3  ;;  %s271_s20 = scalar_lea.vmem (!%p617_p11), %s837_s2, %s779_s13  ;;  %638 = vmatprep.mubr.msk.f32.mxu0 (!%p617_p11), %vm704_vm2, %v703_v6  ;;  %v365_v9 = vadd.f32 (!%p617_p11), %v620_v5, %v364_v8  ;;  %643 = vmatprep.mubr.msk.f32.mxu1 (!%p617_p11), %vm704_vm2, %v703_v6  ;;  %v270_v10 = vld [vmem:[%s269_s16] sm:$0xff] (!%p617_p11)  ;;  %s453_s27 = scalar_lea.vmem (!%p617_p11), %s838_s3, %s779_s13 }
  0x2e   : > { %v272_v11 = vld [vmem:[%s271_s20] sm:$0xff] (!%p617_p11)  ;;  %674 = vset.pattern.permute.xlu0 (!%p617_p11), %v705_v12  ;;  %675 = vset.pattern.permute.xlu1 (!%p617_p11), %v705_v12  ;;  %s458_s30 = scalar_lea.vmem (!%p617_p11), %s839_s4, %s779_s13  ;;  %p623_p12 = scmp.ge.s32.totalorder (!%p617_p11), %s749_s21, 2 }
  0x2f   : > { %637 = vmatpush3.msra.mxu0 (!%p617_p11), %v275_v7  ;;  %642 = vmatpush3.msra.mxu1 (!%p617_p11), %v365_v9  ;;  %v454_v36 = vld [vmem:[%s453_s27] sm:$0xff] (!%p617_p11) }
  0x30   : > { %639 = vmatmul.mubr.msk.f32.vlgmr.msra.gmra.mrb[0].mxu0 (!%p617_p11), %vm281_vm1, %v270_v10  ;;  %644 = vmatmul.mubr.msk.f32.vlgmr.msra.gmra.mrb[0].mxu1 (!%p617_p11), %vm281_vm1, %v270_v10  ;;  %v459_v39 = vld [vmem:[%s458_s30] sm:$0xff] (!%p617_p11) }
  0x31   : > { %278 = vperm.xlu0 (!%p617_p11), %674, %v272_v11  }
  0xb0   : > { %v279_v13 = vpop.permute.xlu0 %278 }
 0x103   : > { %v351_v14 = vpop.f32.mrb[0].mxu0  ;;  %v432_v16 = vpop.f32.mrb[0].mxu1 }
 0x104   : > { %v352_v15 = vadd.f32 %v351_v14, %v279_v13  ;;  %v640_v17 = vpop.f32.mrb[1].mxu0  ;;  %v433_v18 = vadd.f32 %v432_v16, %v279_v13  ;;  %v645_v19 = vpop.f32.mrb[1].mxu1 }
 0x106   : > { %v355_v20 = vmax.f32 %v352_v15, 0.0  ;;  %v436_v21 = vmax.f32 %v433_v18, 0.0 }
 0x108   : > { %357 = vst.msk [vmem:[%s772_s12] sm:$0xff] %vm356_vm3, %v355_v20  ;;  %v359_v22 = vmul.f32 %v355_v20, %v355_v20  ;;  %622 = vst.msk [vmem:[%s772_s12 + $0x8] sm:$0xff] %vm356_vm3, %v436_v21  ;;  %v439_v23 = vadd.f32 %v436_v21, %v355_v20  ;;  %v440_v24 = vmul.f32 %v436_v21, %v436_v21 }
 0x10a   : > { %v442_v25 = vsel %vm356_vm3, %v439_v23, 0.0  ;;  %v441_v26 = vadd.f32 %v440_v24, %v359_v22 }
 0x10b   : > { %443 = vadd.xlane.f32.xlu0 %v442_v25 }
 0x10c   : > { %v445_v27 = vsel %vm356_vm3, %v441_v26, 0.0 }
 0x10d   : > { %446 = vadd.xlane.f32.xlu1 %v445_v27 }
 0x10f   : > { %v463_v43 = vld [vmem:[%s772_s12] sm:$0xff] }
 0x198   : > { %v444_v28 = vpop.xlane.xlu0 %443 }
 0x199   : > { %v448_v29 = vmul.f32 0.03125, %v444_v28 }
 0x19a   : > { %v447_v30 = vpop.xlane.xlu1 %446 }
 0x19b   : > { %v450_v31 = vmul.f32 %v448_v29, %v448_v29  ;;  %v449_v32 = vmul.f32 0.03125, %v447_v30 }
 0x19d   : > { %v451_v33 = vsub.f32 %v449_v32, %v450_v31 }
 0x19f   : > { %v452_v34 = vmax.f32 %v451_v33, 0.0 }
 0x1a1   : > { %v455_v35 = vadd.f32 1e-05, %v452_v34 }
 0x1a3   : > { %676 = vrsqrt.f32 %v455_v35 }
 0x1ad   : > { %v677_v37 = vpop.eup %676 }
 0x1ae   : > { %v457_v38 = vmul.f32 %v677_v37, %v454_v36 }
 0x1b0   : > { %466 = vperm.xlu1 %675, %v457_v38   ;;  %v460_v40 = vmul.f32 %v457_v38, %v448_v29 }
 0x1b2   : > { %v461_v41 = vsub.f32 %v459_v39, %v460_v40 }
 0x1b4   : > { %472 = vperm.xlu1 %675, %v461_v41  }
 0x22f   : > { %v467_v42 = vpop.permute.xlu1 %466 }
 0x230   : > { %v469_v44 = vmul.f32 %v467_v42, %v463_v43  ;;  %479 = sbr.rel (%p623_p12) target bundleno = 567 (0x237), region = 90 }
 0x233   : > { %v473_v45 = vpop.permute.xlu1 %472 }
 0x234   : > { %v475_v46 = vadd.f32 %v473_v45, %v469_v44 }
 0x236   : > { %476 = vst.msk [vmem:[%s772_s12] sm:$0xff] %vm356_vm3, %v475_v46  ;;  %480 = vst.msk [vmem:[#allocation2] sm:$0xff] (!%p623_p12), %vm356_vm3, %v475_v46 }
 0x237 PF: > { %v624_v47 = vld [vmem:[%s772_s12 + $0x8] sm:$0xff]  ;;  %487 = sbr.rel (%p623_p12) target bundleno = 574 (0x23e), region = 94 }
 0x238   : > { %v482_v48 = vmul.f32 %v624_v47, %v467_v42 }
 0x23a   : > { %v483_v49 = vadd.f32 %v482_v48, %v473_v45 }
 0x23c   : > { %625 = vst.msk [vmem:[%s772_s12 + $0x8] sm:$0xff] %vm356_vm3, %v483_v49  ;;  %488 = vst.msk [vmem:[#allocation2 + $0x8] sm:$0xff] (!%p623_p12), %vm356_vm3, %v483_v49 }
 0x23e PF: > { %p627_p13 = scmp.lt.s32.totalorder %s749_s21, 3 }
 0x23f   : > { %v493_v50 = vld [vmem:[%s770_s11] sm:$0xff] (!%p627_p13)  ;;  %vm495_vm4 = vcmask (!%p627_p13), 130048   ;;  %v494_v51 = vld [vmem:[%s770_s11 + $0x8] sm:$0xff] (!%p627_p13) }
 0x240   : > { %492 = sbr.rel (%p627_p13) target bundleno = 583 (0x247), region = 98  ;;  %496 = vst.msk [vmem:[%s772_s12] sm:$0xff] (!%p627_p13), %vm495_vm4, %v493_v50  ;;  %497 = vst.msk [vmem:[%s772_s12 + $0x8] sm:$0xff] (!%p627_p13), %vm495_vm4, %v494_v51 }
 0x247 PF: > { %504 = sbr.rel (!%p761_p5) target bundleno = 590 (0x24e), region = 102  ;;  %s629_s6 = sshll.u32 (%p761_p5), %s749_s21, 3  ;;  %v536_v52 = vld [vmem:[%s772_s12] sm:$0xff] (%p761_p5)  ;;  %v538_v53 = vld [vmem:[%s772_s12 + $0x8] sm:$0xff] (%p761_p5) }
 0x248   : > { %s506_s9 = scalar_lea.vmem (%p761_p5), %s840_s5, %s629_s6 }
 0x249   : > { %537 = vst [vmem:[%s506_s9] sm:$0xff] (%p761_p5), %v536_v52  ;;  %539 = vst [vmem:[%s506_s9 + $0x20] sm:$0xff] (%p761_p5), %v538_v53 }
 0x24e PF: > { %p12_p0 = scmp.ge.s32.totalorder %s751_s22, 6   ;;  %s842_s18 = smov %s696_s19 }
 0x24f   : > { %s843_s19 = smov %s759_s25  ;;  %s844_s20 = smov %s751_s22 }
 0x250   :  { %14 = sbr.rel (!%p12_p0) target bundleno = 2 (0x2), region = 178 }

</bundles_post_ra>
